<compile_context>
chip_gen: v7x
topology: tpu7x:2x2x1
jax: 0.10.0
libtpu: 0.0.40
codegen_flags: <defaults>
</compile_context>

<pallas_src>
import math

import jax
import jax.numpy as jnp
from jax.experimental import pallas as pl
from jax.experimental.pallas import tpu as pltpu


# --------------------------------------------------------------------------
# Block-size selection (perf feedback: big blocks, but keep >= 2 grid steps).
# --------------------------------------------------------------------------
def _pick_batch_tile(lead, per_row_bytes, target_bytes=2 * 1024 * 1024):
    """Largest divisor bt of `lead` with bt*per_row_bytes <= target_bytes.

    Keeps at least 2 grid steps whenever lead >= 2 so the leading 'parallel'
    axis can be split across both v7x TensorCores.
    """
    lead = max(int(lead), 1)
    best = 1
    for bt in range(1, lead + 1):
        if lead % bt:
            continue
        if bt * per_row_bytes > target_bytes:
            continue
        if lead >= 2 and lead // bt < 2:
            continue
        best = bt
    return best


# --------------------------------------------------------------------------
# Kernels
# --------------------------------------------------------------------------
def _make_elementwise_kernel(op):
    def kernel(x_ref, o_ref):
        o_ref[...] = op(x_ref[...]).astype(o_ref.dtype)
    return kernel


def _softmax_kernel(x_ref, o_ref):
    # Block: (bt, K, M); softmax over the sublane (K) axis.
    x = x_ref[...].astype(jnp.float32)
    m = jnp.max(x, axis=1, keepdims=True)
    e = jnp.exp(x - m)
    o_ref[...] = (e / jnp.sum(e, axis=1, keepdims=True)).astype(o_ref.dtype)


def _logsoftmax_kernel(x_ref, o_ref):
    x = x_ref[...].astype(jnp.float32)
    m = jnp.max(x, axis=1, keepdims=True)
    s = x - m
    lse = jnp.log(jnp.sum(jnp.exp(s), axis=1, keepdims=True))
    o_ref[...] = (s - lse).astype(o_ref.dtype)


def _argmax_kernel(x_ref, o_ref):
    # Block: (bt, K, M) -> (bt, 1, M) int32; first index of the maximum
    # (matches torch.argmax tie-breaking).
    x = x_ref[...]
    k = x.shape[1]
    m = jnp.max(x, axis=1, keepdims=True)
    idx = jax.lax.broadcasted_iota(jnp.int32, x.shape, 1)
    cand = jnp.where(x == m, idx, jnp.int32(k))
    o_ref[...] = jnp.min(cand, axis=1, keepdims=True).astype(o_ref.dtype)


# --------------------------------------------------------------------------
# Pallas wrappers
# --------------------------------------------------------------------------
def _elementwise(x, op):
    """Apply `op` elementwise via a lane-dense (lead, 1, rest) tiling."""
    if x.ndim == 0:
        x = x.reshape(1)
    shape = x.shape
    lead = shape[0]
    rest = int(x.size // lead)
    x3 = x.reshape(lead, 1, rest)

    bt = _pick_batch_tile(lead, rest * x.dtype.itemsize)
    grid = (lead // bt,)

    out = pl.pallas_call(
        _make_elementwise_kernel(op),
        out_shape=jax.ShapeDtypeStruct((lead, 1, rest), x.dtype),
        grid_spec=pltpu.PrefetchScalarGridSpec(
            num_scalar_prefetch=0,
            grid=grid,
            in_specs=[pl.BlockSpec((bt, 1, rest), lambda b: (b, 0, 0))],
            out_specs=pl.BlockSpec((bt, 1, rest), lambda b: (b, 0, 0)),
        ),
        compiler_params=pltpu.CompilerParams(
            dimension_semantics=("parallel",)),
    )(x3)
    return out.reshape(shape)


def _dim_reduce(x, kind, dim):
    """softmax / logsoftmax / argmax along `dim` via a (lead, K, M) tiling."""
    ndim = x.ndim
    if ndim < 2:
        # TODO(synk): rank-1 / rank-0 reduction inputs are not tiled here.
        raise NotImplementedError("dim reductions need ndim >= 2")
    dim = dim % ndim
    xm = jnp.moveaxis(x, dim, 1) if dim != 1 else x
    lead, k = xm.shape[0], xm.shape[1]
    m = int(math.prod(xm.shape[2:]))
    x3 = xm.reshape(lead, k, m)

    bt = _pick_batch_tile(lead, k * m * x.dtype.itemsize)
    grid = (lead // bt,)

    if kind == "argmax":
        kernel = _argmax_kernel
        out_shape = jax.ShapeDtypeStruct((lead, 1, m), jnp.int32)
        out_block = (bt, 1, m)
    else:
        kernel = _softmax_kernel if kind == "softmax" else _logsoftmax_kernel
        out_shape = jax.ShapeDtypeStruct((lead, k, m), x.dtype)
        out_block = (bt, k, m)

    out = pl.pallas_call(
        kernel,
        out_shape=out_shape,
        grid_spec=pltpu.PrefetchScalarGridSpec(
            num_scalar_prefetch=0,
            grid=grid,
            in_specs=[pl.BlockSpec((bt, k, m), lambda b: (b, 0, 0))],
            out_specs=pl.BlockSpec(out_block, lambda b: (b, 0, 0)),
        ),
        compiler_params=pltpu.CompilerParams(
            dimension_semantics=("parallel",)),
    )(x3)

    if kind == "argmax":
        return out.reshape((lead,) + xm.shape[2:])
    out = out.reshape(xm.shape)
    return jnp.moveaxis(out, 1, dim) if dim != 1 else out


# --------------------------------------------------------------------------
# Activation dispatcher (mirrors the PyTorch module's forward semantics)
# --------------------------------------------------------------------------
def activation_forward(x, name=None, **params):
    if name is None or name == "identity":
        return _elementwise(x, lambda v: v)
    if name == "sigmoid":
        return _elementwise(x, jax.nn.sigmoid)
    if name == "tanh":
        return _elementwise(x, jnp.tanh)
    if name == "clamp":
        lo = params.get("min", 0)
        hi = params.get("max", 1)
        return _elementwise(x, lambda v: jnp.clip(v, lo, hi))
    if name == "softmax2d":
        return _dim_reduce(x, "softmax", dim=1)
    if name == "softmax":
        return _dim_reduce(x, "softmax", dim=params.get("dim", 1))
    if name == "logsoftmax":
        return _dim_reduce(x, "logsoftmax", dim=params.get("dim", 1))
    if name == "argmax2d":
        return _dim_reduce(x, "argmax", dim=1)
    if name == "argmax":
        dim = params.get("dim", None)
        if dim is None:
            # TODO(synk): torch.argmax(dim=None) (argmax over the flattened
            # tensor) is not implemented as a Pallas kernel.
            raise NotImplementedError("argmax with dim=None is not translated")
        return _dim_reduce(x, "argmax", dim=dim)
    if callable(name):
        # TODO(synk): arbitrary user-supplied callable activations cannot be
        # translated generically into a Pallas kernel.
        raise NotImplementedError("callable activations are not translated")
    raise ValueError(
        "Activation should be callable/sigmoid/softmax/logsoftmax/tanh/"
        f"argmax/argmax2d/clamp/None; got {name}")


# --------------------------------------------------------------------------
# Demo / self-check
# --------------------------------------------------------------------------
if __name__ == "__main__":
    key = jax.random.PRNGKey(0)
    B, C, H, W = 2, 4, 16, 16
    x = jax.random.normal(key, (B, C, H, W), jnp.float32)

    checks = [
        ("identity", {}, lambda v: v),
        ("sigmoid", {}, jax.nn.sigmoid),
        ("tanh", {}, jnp.tanh),
        ("clamp", {"min": -0.5, "max": 0.5},
         lambda v: jnp.clip(v, -0.5, 0.5)),
        ("softmax2d", {}, lambda v: jax.nn.softmax(v, axis=1)),
        ("softmax", {"dim": 1}, lambda v: jax.nn.softmax(v, axis=1)),
        ("logsoftmax", {"dim": 1}, lambda v: jax.nn.log_softmax(v, axis=1)),
        ("argmax2d", {}, lambda v: jnp.argmax(v, axis=1).astype(jnp.int32)),
        ("argmax", {"dim": 3}, lambda v: jnp.argmax(v, axis=3).astype(jnp.int32)),
    ]

    for name, kwargs, ref_fn in checks:
        out = jax.block_until_ready(activation_forward(x, name, **kwargs))
        ref = ref_fn(x)
        assert out.shape == ref.shape, (name, out.shape, ref.shape)
        if jnp.issubdtype(out.dtype, jnp.integer):
            assert jnp.array_equal(out, ref), f"mismatch for {name}"
        else:
            assert jnp.allclose(out, ref, atol=1e-5, rtol=1e-5), \
                f"mismatch for {name}"

    print("KERNEL_OK")
</pallas_src>

<mosaic_0001>
module attributes {stable_mosaic.version = 11 : i64} {
  func.func @kernel(%arg0: i32, %arg1: memref<1x1x1024xf32, #tpu.memory_space<vmem>>, %arg2: memref<1x1x1024xf32, #tpu.memory_space<vmem>>) attributes {dimension_semantics = [#tpu.dimension_semantics<parallel>], iteration_bounds = array<i64: 2>, scalar_prefetch = 0 : i64, scratch_operands = 0 : i64, tpu.core_type = #tpu.core_type<tc>, window_params = [{transform_indices = @transform_0, window_bounds = array<i64: 1, 1, 1024>}, {transform_indices = @transform_1, window_bounds = array<i64: 1, 1, 1024>}]} {
    %c0 = arith.constant 0 : index
    %c0_0 = arith.constant 0 : index
    %c0_1 = arith.constant 0 : index
    %0 = vector.load %arg1[%c0, %c0_0, %c0_1] : memref<1x1x1024xf32, #tpu.memory_space<vmem>>, vector<1x1x1024xf32>
    %c0_2 = arith.constant 0 : index
    %c0_3 = arith.constant 0 : index
    %c0_4 = arith.constant 0 : index
    %1 = vector.load %arg2[%c0_2, %c0_3, %c0_4] : memref<1x1x1024xf32, #tpu.memory_space<vmem>>, vector<1x1x1024xf32>
    tpu.vector_store %arg2[%c0_2, %c0_3, %c0_4], %0 {strides = array<i32>} : memref<1x1x1024xf32, #tpu.memory_space<vmem>>, vector<1x1x1024xf32>,
    return
  }
  func.func @transform_0(%arg0: i32) -> (i32, i32, i32) {
    %c0_i32 = arith.constant 0 : i32
    %c0_i32_0 = arith.constant 0 : i32
    %c0_i32_1 = arith.constant 0 : i32
    return %arg0, %c0_i32, %c0_i32_0 : i32, i32, i32
  }
  func.func @transform_1(%arg0: i32) -> (i32, i32, i32) {
    %c0_i32 = arith.constant 0 : i32
    %c0_i32_0 = arith.constant 0 : i32
    %c0_i32_1 = arith.constant 0 : i32
    return %arg0, %c0_i32, %c0_i32_0 : i32, i32, i32
  }
}

</mosaic_0001>

<bundles_post_ra>
// kernel: tpu_custom_call.1
= control target key start
LH: loop header
LB: loop body
LE: loop exit
PB: predicated region body
PF: predicated region fallthrough
CT: control target
= control target key end

     0   :  { %6 = vsyncpa [#allocation3], 0  ;;  %s553_s0 = inlined_call_operand.hbm [shape: f32[2,1,1024], index: 0, kind: input, shape index: {}]   ;;  %s554_s1 = inlined_call_operand.hbm [shape: f32[2,1,1024], index: 1, kind: output, shape index: {}]  }
   0x1   :  { %8 = vsyncpa [#allocation3 + $0x1], 0 }
   0x2   :  { %9 = vsyncpa [#allocation4], 0 }
   0x3   :  { %11 = vsyncpa [#allocation4 + $0x1], 0  ;;  %s392_s6 = smov 0   ;;  %s394_s7 = smov 0  }
   0x4   :  { %s396_s8 = smov 0   ;;  %s398_s9 = smov 0  }
   0x5 LB: > { %s413_s10 = sadd.s32 4294967295, %s378_s9   ;;  %s220_s11 = sadd.s32 4294967294, %s378_s9   ;;  %s378_s9 = sphi %s398_s9, %s569_s9   ;;  %s374_s8 = sphi %s396_s8, %s568_s8   ;;  %s370_s7 = sphi %s394_s7, %s567_s7   ;;  %s366_s6 = sphi %s392_s6, %s566_s6  }
   0x6   : > { %s417_s12 = sadd.s32 1, %s378_s9   ;;  %s24_s13 = sadd.s32 1, %s374_s8 }
   0x7   : > { %s21_s14 = ssub.s32 %s378_s9, %s417_s12  ;;  %p31_p0 = scmp.ne.s32.totalorder %s374_s8, %s370_s7 }
   0x8   : > { %p22_p1 = scmp.eq.s32.totalorder %s21_s14, 0  ;;  %p32_p2 = scmp.eq.s32.totalorder %s378_s9, 0 }
   0x9   : > { %p37_p3 = scmp.ne.s32.totalorder %s370_s7, %s366_s6  ;;  %p38_p4 = scmp.eq.s32.totalorder %s413_s10, 0 }
   0xa   : > { %s429_s15 = scalar_select %p22_p1, %s374_s8, %s24_s13  }
   0xb   : > { %p431_p5 = por %p32_p2, %p31_p0  ;;  %p435_p6 = por %p38_p4, %p37_p3 }
   0xc   : > { %p61_p7 = scmp.eq.s32.totalorder %s413_s10, 1  ;;  %p67_p8 = scmp.eq.s32.totalorder %s220_s11, 1 }
   0xd   : > { %p248_p10 = scmp.lt.s32.totalorder %s378_s9, 2  ;;  %s87_s20 = sand.u32 1, %s374_s8  }
   0xe   : > { %p442_p11 = por %p61_p7, %p31_p0  ;;  %p446_p12 = por %p67_p8, %p37_p3 }
   0xf   : > { %s234_s21 = sshll.u32 %s378_s9, 7  ;;  %s223_s22 = sshll.u32 %s87_s20, 3 }
  0x10   : > { %s558_s18 = scalar_select %p442_p11, 1, 0 }
  0x11   : > { %s559_s19 = scalar_select %p446_p12, 1, 0 }
  0x12   : > { %s455_s25 = scalar_lea.hbm %s553_s0, %s234_s21  ;;  %s91_s26 = scalar_lea.vmem [#allocation2], %s223_s22 }
  0x13   : > { %s99_s27 = sshll.u32 %s91_s26, 4  ;;  %p459_p13 = pnand %p248_p10, %p431_p5  ;;  %s463_s27 = int_to_ptr.vmem [resolvable:$true] %s99_s27 }
  0x14   : > { %s88_s29 = scalar_lea.sflag [#allocation3], %s87_s20  ;;  %s282_s30 = scalar_lea.hbm %s455_s25, 128 }
  0x15   : > { %p283_p2 = scmp.ne.s32.totalorder %s455_s25, %s282_s30  ;;  %p284_p3 = pneg %p459_p13 }
  0x16   : > { %s287_s4 = scalar_lea.hbm %s553_s0, 256  ;;  %p288_p5 = scmp.lt.u32.totalorder %s455_s25, %s553_s0 }
  0x17   : > { %p285_p4 = pnand %p284_p3, %p283_p2  ;;  %p289_p8 = scmp.lt.u32.totalorder %s287_s4, %s282_s30 }
  0x18   : > { %p291_p9 = scmp.lt.u32.totalorder %s282_s30, %s455_s25 }
  0x19   : > { %p286_p7 = pneg %p285_p4  ;;  %p290_p10 = por %p289_p8, %p288_p5 }
  0x1b   : > { %p292_p0 = por %p291_p9, %p290_p10 }
  0x1d   : > { %p293_p1 = pnand %p292_p0, %p286_p7 }
  0x1f   : > { %296 = shalt.err (!%p293_p1)
}
  0x20   : > { %s297_s13 = scalar_lea.vmem %s463_s27, 128  ;;  %s380_s14 = smov [#allocation2]  }
  0x21   : > { %p298_p2 = scmp.ne.s32.totalorder %s463_s27, %s297_s13  ;;  %s302_s16 = sshll.u32 %s380_s14, 4  ;;  %s303_s16 = int_to_ptr.vmem [resolvable:$false] %s302_s16 }
  0x22   : > { %s304_s20 = scalar_lea.vmem %s303_s16, 256  ;;  %p305_p11 = scmp.lt.s32.totalorder %s463_s27, %s303_s16 }
  0x23   : > { %p300_p4 = pnand %p298_p2, %p284_p3  ;;  %p306_p5 = scmp.lt.s32.totalorder %s304_s20, %s297_s13 }
  0x25   : > { %p301_p12 = pneg %p300_p4  ;;  %p307_p8 = por %p306_p5, %p305_p11 }
  0x27   : > { %p308_p9 = pnand %p307_p8, %p301_p12 }
  0x29   : > { %311 = shalt.err (!%p308_p9)
}
  0x2a   : > { %243 = dma.hbm_to_vmem [thread:$0]  (!%p459_p13), %s455_s25, 128, %s463_s27, %s88_s29  }
  0x2b   : > { %p561_p0 = scmp.lt.s32.totalorder %s378_s9, 3  ;;  %p562_p1 = scmp.ge.s32.totalorder %s378_s9, 1 }
  0x2d   : > { %p105_p3 = pnand %p562_p1, %p561_p0 }
  0x2e   : > { %s497_s21 = sand.u32 (!%p105_p3), 1, %s370_s7  }
  0x2f   : > { %108 = sbr.rel (%p105_p3) target bundleno = 81 (0x51), region = 24  ;;  %s227_s22 = sshll.u32 (!%p105_p3), %s497_s21, 3 }
  0x30   : > { %s111_s23 = scalar_lea.sflag (!%p105_p3), [#allocation3], %s497_s21  ;;  %s114_s24 = scalar_lea.vmem (!%p105_p3), [#allocation2], %s227_s22 }
  0x36   : > { %357 = dma.done.wait (%p435_p6), %s111_s23, 128  }
  0x37   : > { %359 = vsyncadd (%p435_p6), %s111_s23, 4294967168  ;;  %s132_s25 = scalar_lea.vmem [#allocation5], %s227_s22  ;;  %s235_s27 = sshll.u32 %s413_s10, 7  ;;  %v133_v0 = vld [vmem:[%s114_s24] sm:$0xff] }
  0x38   : > { %s150_s26 = sshll.u32 %s132_s25, 4  ;;  %s511_s30 = scalar_lea.hbm %s554_s1, %s235_s27  ;;  %134 = vst [vmem:[%s132_s25] sm:$0xff] %v133_v0  ;;  %s506_s26 = int_to_ptr.vmem [resolvable:$true] %s150_s26 }
  0x39   : > { %s136_s17 = scalar_lea.sflag [#allocation4], %s497_s21  ;;  %s312_s2 = scalar_lea.vmem %s506_s26, 128 }
  0x3a   : > { %p313_p6 = scmp.ne.s32.totalorder %s506_s26, %s312_s2  ;;  %p563_p11 = scmp.ne.s32.totalorder %s558_s18, 0 }
  0x3b   : > { %s381_s3 = smov [#allocation5]  }
  0x3c   : > { %p314_p12 = pnand %p313_p6, %p563_p11  ;;  %s316_s10 = sshll.u32 %s381_s3, 4  ;;  %s317_s10 = int_to_ptr.vmem [resolvable:$false] %s316_s10 }
  0x3d   : > { %s318_s4 = scalar_lea.vmem %s317_s10, 256  ;;  %p319_p7 = scmp.lt.s32.totalorder %s506_s26, %s317_s10 }
  0x3e   : > { %p315_p13 = pneg %p314_p12  ;;  %p320_p10 = scmp.lt.s32.totalorder %s318_s4, %s312_s2 }
  0x40   : > { %p321_p2 = por %p320_p10, %p319_p7 }
  0x42   : > { %p322_p4 = pnand %p321_p2, %p315_p13 }
  0x44   : > { %325 = shalt.err (!%p322_p4)
}
  0x45   : > { %s326_s5 = scalar_lea.hbm %s511_s30, 128  ;;  %s330_s14 = scalar_lea.hbm %s554_s1, 256 }
  0x46   : > { %p327_p5 = scmp.ne.s32.totalorder %s511_s30, %s326_s5  ;;  %p331_p0 = scmp.lt.u32.totalorder %s511_s30, %s554_s1 }
  0x47   : > { %p332_p1 = scmp.lt.u32.totalorder %s330_s14, %s326_s5  ;;  %p334_p6 = scmp.lt.u32.totalorder %s326_s5, %s511_s30 }
  0x48   : > { %p328_p8 = pnand %p327_p5, %p563_p11 }
  0x49   : > { %p333_p3 = por %p332_p1, %p331_p0 }
  0x4a   : > { %p329_p9 = pneg %p328_p8 }
  0x4b   : > { %p335_p12 = por %p334_p6, %p333_p3 }
  0x4d   : > { %p336_p13 = pnand %p335_p12, %p329_p9 }
  0x4f   : > { %339 = shalt.err (!%p336_p13)
}
  0x50   : > { %238 = dma.vmem_to_hbm [thread:$0]  (%p563_p11), %s506_s26, 128, %s511_s30, %s136_s17  }
  0x51 PF: > { %s162_s21 = sand.u32 1, %s366_s6   ;;  %p564_p7 = scmp.ne.s32.totalorder %s559_s19, 0 }
  0x52   : > { %p565_p10 = scmp.ge.s32.totalorder %s378_s9, 2  ;;  %s163_s22 = scalar_lea.sflag [#allocation4], %s162_s21 }
  0x54   : > { %p245_p2 = pnand %p565_p10, %p564_p7 }
  0x56   : > { %361 = dma.done.wait (!%p245_p2), %s163_s22, 128  }
  0x57   : > { %363 = vsyncadd (!%p245_p2), %s163_s22, 4294967168  ;;  %p14_p4 = scmp.ge.s32.totalorder %s417_s12, 4   ;;  %s566_s6 = smov %s370_s7 }
  0x58   : > { %s567_s7 = smov %s374_s8  ;;  %s568_s8 = smov %s429_s15 }
  0x59   : > { %s569_s9 = smov %s417_s12  ;;  %16 = sbr.rel (!%p14_p4) target bundleno = 5 (0x5), region = 69 }
  0x60   :  { %168 = vsyncpa [#allocation3], 1 }
  0x61   :  { %170 = vsyncpa [#allocation3 + $0x1], 1 }
  0x62   :  { %171 = vsyncpa [#allocation4], 1 }
  0x63   :  { %173 = vsyncpa [#allocation4 + $0x1], 1 }

</bundles_post_ra>
